<compile_context>
chip_gen: v5e
topology: v5e:2x2
jax: 0.10.0
libtpu: 0.0.40
codegen_flags: <defaults>
</compile_context>

<pallas_src>
import jax
import jax.numpy as jnp
from jax.experimental import pallas as pl
from jax.experimental.pallas import tpu as pltpu


def _round_up(x, m):
    return ((x + m - 1) // m) * m


# ----------------------------- Pallas kernel ---------------------------------

def _make_textcnn_kernel(seq_len, fs_max):
    """Kernel refs:
       embed_ref : (TB, L_pad, E)      bf16   zero-padded in time
       w_ref     : (fs_max*E, N_pad)   bf16   stacked/zero-padded conv weights
       b_ref     : (1, N_pad)          f32    stacked conv bias
       mask_ref  : (L, N_pad)          f32    0 for valid window start, -1e30 else
       fc_w_ref  : (N_pad, C_pad)      bf16   padded FC weight (transposed)
       fc_b_ref  : (1, C_pad)          f32
       out_ref   : (TB, C_pad)         f32
    """

    def kernel(embed_ref, w_ref, b_ref, mask_ref, fc_w_ref, fc_b_ref, out_ref):
        x = embed_ref[...]                                     # (TB, L_pad, E) bf16
        tb, _, e = x.shape

        # im2col: one fs_max-tap window per time step; zero time-padding in the
        # input makes every window well defined, tail masked before the max.
        patches = jnp.concatenate(
            [x[:, k:k + seq_len, :] for k in range(fs_max)], axis=-1
        ).reshape(tb * seq_len, fs_max * e)                    # (TB*L, fs_max*E)

        # Fused conv over ALL filter sizes: one lane/sublane-dense MXU matmul.
        conv = jnp.dot(patches, w_ref[...],
                       preferred_element_type=jnp.float32)     # (TB*L, N_pad)
        conv = jnp.maximum(conv + b_ref[...], 0.0)             # bias + ReLU
        conv = conv.reshape(tb, seq_len, -1) + mask_ref[...][None]  # mask tails
        feat = jnp.max(conv, axis=1)                           # (TB, N_pad)

        # Fully connected layer (padded columns of fc_w are zero).
        out = jnp.dot(feat.astype(fc_w_ref.dtype), fc_w_ref[...],
                      preferred_element_type=jnp.float32)      # (TB, C_pad)
        out_ref[...] = out + fc_b_ref[...]

    return kernel


# ----------------------------- wrapper ---------------------------------------

def textcnn_forward(embed, conv_ws_torch, conv_bs, fc_w_torch, fc_b,
                    filter_sizes, *, block_b=8):
    """embed: (B, L, E) f32; conv_ws_torch[i]: (F, 1, fs_i, E); conv_bs[i]: (F,);
       fc_w_torch: (C, F*n_fs); fc_b: (C,).  Returns (B, C) f32."""
    B, L, E = embed.shape
    n_fs = len(filter_sizes)
    F = conv_ws_torch[0].shape[0]
    C = fc_w_torch.shape[0]
    fs_max = max(filter_sizes)

    n_pad = _round_up(n_fs * F, 128)          # lane-dense filter axis
    c_pad = _round_up(C, 128)                 # lane-dense class axis
    l_pad = _round_up(L + fs_max - 1, 8)      # sublane-aligned padded time
    k_dim = fs_max * E                        # im2col contraction dim

    # Batch tiling (parallel grid axis).  Keep the output block's sublane dim
    # either a multiple of 8 or equal to the full (padded) batch.
    tb = min(block_b, B)
    b_pad = _round_up(B, tb)
    if tb != b_pad and tb % 8 != 0:
        tb = b_pad

    # --- pack conv weights / biases / tail mask ------------------------------
    w_stack = jnp.zeros((k_dim, n_pad), jnp.float32)
    b_stack = jnp.zeros((1, n_pad), jnp.float32)
    mask = jnp.zeros((L, n_pad), jnp.float32)
    for g, (w, b, fs) in enumerate(zip(conv_ws_torch, conv_bs, filter_sizes)):
        # (F, 1, fs, E) -> (fs, E, F) -> (fs*E, F); rows k*E+e, cols = filters.
        wk = jnp.transpose(w[:, 0, :, :], (1, 2, 0)).reshape(fs * E, F)
        w_stack = w_stack.at[:fs * E, g * F:(g + 1) * F].set(wk)
        b_stack = b_stack.at[0, g * F:(g + 1) * F].set(b)
        # window start t is valid iff t <= L - fs
        mask = mask.at[L - fs + 1:, g * F:(g + 1) * F].set(-1e30)

    fc_w_pad = jnp.zeros((n_pad, c_pad), jnp.float32)
    fc_w_pad = fc_w_pad.at[:n_fs * F, :C].set(fc_w_torch.T)
    fc_b_pad = jnp.zeros((1, c_pad), jnp.float32)
    fc_b_pad = fc_b_pad.at[0, :C].set(fc_b)

    # --- pad embed (batch + time) and cast matmul inputs to bf16 -------------
    embed_p = jnp.zeros((b_pad, l_pad, E), jnp.bfloat16)
    embed_p = embed_p.at[:B, :L, :].set(embed.astype(jnp.bfloat16))

    kernel = _make_textcnn_kernel(L, fs_max)
    out = pl.pallas_call(
        kernel,
        out_shape=jax.ShapeDtypeStruct((b_pad, c_pad), jnp.float32),
        grid=(b_pad // tb,),
        in_specs=[
            pl.BlockSpec((tb, l_pad, E), lambda i: (i, 0, 0)),
            pl.BlockSpec((k_dim, n_pad), lambda i: (0, 0)),
            pl.BlockSpec((1, n_pad), lambda i: (0, 0)),
            pl.BlockSpec((L, n_pad), lambda i: (0, 0)),
            pl.BlockSpec((n_pad, c_pad), lambda i: (0, 0)),
            pl.BlockSpec((1, c_pad), lambda i: (0, 0)),
        ],
        out_specs=pl.BlockSpec((tb, c_pad), lambda i: (i, 0)),
        compiler_params=pltpu.CompilerParams(
            dimension_semantics=("parallel",)),
    )(embed_p, w_stack.astype(jnp.bfloat16), b_stack, mask,
      fc_w_pad.astype(jnp.bfloat16), fc_b_pad)

    return out[:B, :C]


# ----------------------------- reference (pure JAX) ---------------------------

def textcnn_reference(embed, conv_ws_torch, conv_bs, fc_w_torch, fc_b,
                      filter_sizes):
    """f32 reference using lax.conv_general_dilated (mirrors PyTorch Conv2d)."""
    x = embed[:, None, :, :]  # (B, 1, L, E)  NCHW
    pooled = []
    for w, b in zip(conv_ws_torch, conv_bs):
        c = jax.lax.conv_general_dilated(
            x, w, window_strides=(1, 1), padding="VALID",
            dimension_numbers=("NCHW", "OIHW", "NCHW"))
        c = c + b[None, :, None, None]
        c = jax.nn.relu(c)[..., 0]            # (B, F, L_out)
        pooled.append(jnp.max(c, axis=2))     # (B, F)
    feat = jnp.concatenate(pooled, axis=1)
    return feat @ fc_w_torch.T + fc_b[None, :]


# ----------------------------- main -------------------------------------------

if __name__ == "__main__":
    vocab_size = 50
    emb_dim = 32
    filter_sizes = (2, 3, 4)
    num_filter = 8
    num_classes = 4
    B, L = 16, 16

    key = jax.random.PRNGKey(0)
    k_emb, k_tok, k_fc, k_fcb, *k_convs = jax.random.split(
        key, 4 + 2 * len(filter_sizes))

    # Embedding table (padding_idx=0 -> zero row).
    emb_table = 0.1 * jax.random.normal(k_emb, (vocab_size, emb_dim), jnp.float32)
    emb_table = emb_table.at[0].set(0.0)

    # Token ids.
    tokens = jax.random.randint(k_tok, (B, L), 0, vocab_size)

    # Conv params in PyTorch layout (F, 1, fs, E) / (F,).
    conv_ws_torch, conv_bs = [], []
    for i, fs in enumerate(filter_sizes):
        w = 0.1 * jax.random.normal(
            k_convs[2 * i], (num_filter, 1, fs, emb_dim), jnp.float32)
        b = 0.1 * jax.random.normal(k_convs[2 * i + 1], (num_filter,), jnp.float32)
        conv_ws_torch.append(w)
        conv_bs.append(b)

    D = num_filter * len(filter_sizes)
    fc_w_torch = 0.1 * jax.random.normal(k_fc, (num_classes, D), jnp.float32)
    fc_b = 0.1 * jax.random.normal(k_fcb, (num_classes,), jnp.float32)

    # Embedding lookup (plain-JAX glue).
    embed = emb_table[tokens]             # (B, L, E) f32

    out = textcnn_forward(embed, conv_ws_torch, conv_bs, fc_w_torch, fc_b,
                          filter_sizes)
    out = jax.block_until_ready(out)

    ref = textcnn_reference(embed, conv_ws_torch, conv_bs, fc_w_torch, fc_b,
                            filter_sizes)
    assert out.shape == (B, num_classes)
    # bf16 MXU inputs with f32 accumulation vs. full-f32 reference.
    assert jnp.allclose(out, ref, atol=2e-2, rtol=2e-2), (out, ref)

    print("KERNEL_OK")
</pallas_src>

<mosaic_0001>
module attributes {stable_mosaic.version = 11 : i64} {
  func.func @kernel(%arg0: i32, %arg1: memref<8x24x32xbf16, #tpu.memory_space<vmem>>, %arg2: memref<128x128xbf16, #tpu.memory_space<vmem>>, %arg3: memref<1x128xf32, #tpu.memory_space<vmem>>, %arg4: memref<16x128xf32, #tpu.memory_space<vmem>>, %arg5: memref<128x128xbf16, #tpu.memory_space<vmem>>, %arg6: memref<1x128xf32, #tpu.memory_space<vmem>>, %arg7: memref<8x128xf32, #tpu.memory_space<vmem>>) attributes {dimension_semantics = [#tpu.dimension_semantics<parallel>], iteration_bounds = array<i64: 2>, scalar_prefetch = 0 : i64, scratch_operands = 0 : i64, tpu.core_type = #tpu.core_type<tc>, window_params = [{transform_indices = @transform_0, window_bounds = array<i64: 8, 24, 32>}, {pipeline_mode = #tpu.pipeline_mode<synchronous>, transform_indices = @transform_1, window_bounds = array<i64: 128, 128>}, {pipeline_mode = #tpu.pipeline_mode<synchronous>, transform_indices = @transform_2, window_bounds = array<i64: 1, 128>}, {pipeline_mode = #tpu.pipeline_mode<synchronous>, transform_indices = @transform_3, window_bounds = array<i64: 16, 128>}, {pipeline_mode = #tpu.pipeline_mode<synchronous>, transform_indices = @transform_4, window_bounds = array<i64: 128, 128>}, {pipeline_mode = #tpu.pipeline_mode<synchronous>, transform_indices = @transform_5, window_bounds = array<i64: 1, 128>}, {transform_indices = @transform_6, window_bounds = array<i64: 8, 128>}]} {
    %c0 = arith.constant 0 : index
    %c0_0 = arith.constant 0 : index
    %c0_1 = arith.constant 0 : index
    %0 = vector.load %arg1[%c0, %c0_0, %c0_1] : memref<8x24x32xbf16, #tpu.memory_space<vmem>>, vector<8x24x32xbf16>
    %1 = vector.extract_strided_slice %0 {offsets = [0, 0, 0], sizes = [8, 16, 32], strides = [1, 1, 1]} : vector<8x24x32xbf16> to vector<8x16x32xbf16>
    %2 = vector.extract_strided_slice %0 {offsets = [0, 1, 0], sizes = [8, 16, 32], strides = [1, 1, 1]} : vector<8x24x32xbf16> to vector<8x16x32xbf16>
    %3 = vector.extract_strided_slice %0 {offsets = [0, 2, 0], sizes = [8, 16, 32], strides = [1, 1, 1]} : vector<8x24x32xbf16> to vector<8x16x32xbf16>
    %4 = vector.extract_strided_slice %0 {offsets = [0, 3, 0], sizes = [8, 16, 32], strides = [1, 1, 1]} : vector<8x24x32xbf16> to vector<8x16x32xbf16>
    %5 = tpu.concatenate %1, %2, %3, %4 in 2 : vector<8x16x32xbf16>, vector<8x16x32xbf16>, vector<8x16x32xbf16>, vector<8x16x32xbf16> -> vector<8x16x128xbf16>
    %6 = vector.shape_cast %5 : vector<8x16x128xbf16> to vector<128x128xbf16>
    %c0_2 = arith.constant 0 : index
    %c0_3 = arith.constant 0 : index
    %7 = vector.load %arg2[%c0_2, %c0_3] : memref<128x128xbf16, #tpu.memory_space<vmem>>, vector<128x128xbf16>
    %cst = arith.constant dense<0.000000e+00> : vector<128x128xf32>
    %8 = tpu.matmul %6, %7, %cst {dimension_numbers = #tpu.dot_dimension_numbers<[1], [0], [0], [1], [0, 0, 1, 1], [], []>} : vector<128x128xbf16>, vector<128x128xbf16>, vector<128x128xf32> -> vector<128x128xf32>
    %c0_4 = arith.constant 0 : index
    %c0_5 = arith.constant 0 : index
    %9 = vector.load %arg3[%c0_4, %c0_5] : memref<1x128xf32, #tpu.memory_space<vmem>>, vector<1x128xf32>
    %10 = vector.broadcast %9 : vector<1x128xf32> to vector<128x128xf32>
    %11 = arith.addf %8, %10 : vector<128x128xf32>
    %cst_6 = arith.constant 0.000000e+00 : f32
    %12 = vector.broadcast %cst_6 : f32 to vector<128x128xf32>
    %13 = arith.maximumf %11, %12 : vector<128x128xf32>
    %14 = vector.shape_cast %13 : vector<128x128xf32> to vector<8x16x128xf32>
    %c0_7 = arith.constant 0 : index
    %c0_8 = arith.constant 0 : index
    %15 = vector.load %arg4[%c0_7, %c0_8] : memref<16x128xf32, #tpu.memory_space<vmem>>, vector<16x128xf32>
    %16 = vector.shape_cast %15 : vector<16x128xf32> to vector<1x16x128xf32>
    %17 = vector.broadcast %16 : vector<1x16x128xf32> to vector<8x16x128xf32>
    %18 = arith.addf %14, %17 : vector<8x16x128xf32>
    %cst_9 = arith.constant dense<0xFF800000> : vector<8x128xf32>
    %19 = vector.multi_reduction <maximumf>, %18, %cst_9 [1] : vector<8x16x128xf32> to vector<8x128xf32>
    %20 = arith.truncf %19 : vector<8x128xf32> to vector<8x128xbf16>
    %c0_10 = arith.constant 0 : index
    %c0_11 = arith.constant 0 : index
    %21 = vector.load %arg5[%c0_10, %c0_11] : memref<128x128xbf16, #tpu.memory_space<vmem>>, vector<128x128xbf16>
    %cst_12 = arith.constant dense<0.000000e+00> : vector<8x128xf32>
    %22 = tpu.matmul %20, %21, %cst_12 {dimension_numbers = #tpu.dot_dimension_numbers<[1], [0], [0], [1], [0, 0, 1, 1], [], []>} : vector<8x128xbf16>, vector<128x128xbf16>, vector<8x128xf32> -> vector<8x128xf32>
    %c0_13 = arith.constant 0 : index
    %c0_14 = arith.constant 0 : index
    %23 = vector.load %arg6[%c0_13, %c0_14] : memref<1x128xf32, #tpu.memory_space<vmem>>, vector<1x128xf32>
    %24 = vector.broadcast %23 : vector<1x128xf32> to vector<8x128xf32>
    %25 = arith.addf %22, %24 : vector<8x128xf32>
    %c0_15 = arith.constant 0 : index
    %c0_16 = arith.constant 0 : index
    %26 = vector.load %arg7[%c0_15, %c0_16] : memref<8x128xf32, #tpu.memory_space<vmem>>, vector<8x128xf32>
    tpu.vector_store %arg7[%c0_15, %c0_16], %25 {strides = array<i32>} : memref<8x128xf32, #tpu.memory_space<vmem>>, vector<8x128xf32>,
    return
  }
  func.func @transform_0(%arg0: i32) -> (i32, i32, i32) {
    %c0_i32 = arith.constant 0 : i32
    %c0_i32_0 = arith.constant 0 : i32
    %c0_i32_1 = arith.constant 0 : i32
    return %arg0, %c0_i32, %c0_i32_0 : i32, i32, i32
  }
  func.func @transform_1(%arg0: i32) -> (i32, i32) {
    %c0_i32 = arith.constant 0 : i32
    %c0_i32_0 = arith.constant 0 : i32
    %c0_i32_1 = arith.constant 0 : i32
    return %c0_i32, %c0_i32_0 : i32, i32
  }
  func.func @transform_2(%arg0: i32) -> (i32, i32) {
    %c0_i32 = arith.constant 0 : i32
    %c0_i32_0 = arith.constant 0 : i32
    %c0_i32_1 = arith.constant 0 : i32
    return %c0_i32, %c0_i32_0 : i32, i32
  }
  func.func @transform_3(%arg0: i32) -> (i32, i32) {
    %c0_i32 = arith.constant 0 : i32
    %c0_i32_0 = arith.constant 0 : i32
    %c0_i32_1 = arith.constant 0 : i32
    return %c0_i32, %c0_i32_0 : i32, i32
  }
  func.func @transform_4(%arg0: i32) -> (i32, i32) {
    %c0_i32 = arith.constant 0 : i32
    %c0_i32_0 = arith.constant 0 : i32
    %c0_i32_1 = arith.constant 0 : i32
    return %c0_i32, %c0_i32_0 : i32, i32
  }
  func.func @transform_5(%arg0: i32) -> (i32, i32) {
    %c0_i32 = arith.constant 0 : i32
    %c0_i32_0 = arith.constant 0 : i32
    %c0_i32_1 = arith.constant 0 : i32
    return %c0_i32, %c0_i32_0 : i32, i32
  }
  func.func @transform_6(%arg0: i32) -> (i32, i32) {
    %c0_i32 = arith.constant 0 : i32
    %c0_i32_0 = arith.constant 0 : i32
    return %arg0, %c0_i32 : i32, i32
  }
}

</mosaic_0001>

<bundles_post_ra>
// kernel: tpu_custom_call.1
= control target key start
LH: loop header
LB: loop body
LE: loop exit
PB: predicated region body
PF: predicated region fallthrough
CT: control target
= control target key end

     0   :  { %s2034_s0 = inlined_call_operand.hbm [shape: bf16[16,24,32], index: 0, kind: input, shape index: {}]   ;;  %s2035_s1 = inlined_call_operand.hbm [shape: bf16[128,128], index: 1, kind: input, shape index: {}]   ;;  %s2036_s2 = inlined_call_operand.vmem [shape: f32[1,128], index: 2, kind: input, shape index: {}]   ;;  %s2037_s3 = inlined_call_operand.hbm [shape: f32[16,128], index: 3, kind: input, shape index: {}]   ;;  %s2038_s4 = inlined_call_operand.hbm [shape: bf16[128,128], index: 4, kind: input, shape index: {}]   ;;  %s2039_s5 = inlined_call_operand.vmem [shape: f32[1,128], index: 5, kind: input, shape index: {}]   ;;  %s2040_s6 = inlined_call_operand.hbm [shape: f32[16,128], index: 6, kind: output, shape index: {}]  }
   0x1   :  { %2043 = sst [smem:[#allocation15_spill]] %s2035_s1 }
   0x2   :  { %2044 = sst [smem:[#allocation16_spill]] %s2037_s3 }
   0x3   :  { %11 = vsyncpa [#allocation3], 0 }
   0x4   :  { %13 = vsyncpa [#allocation3 + $0x1], 0 }
   0x5   :  { %14 = vsyncpa [#allocation6], 0 }
   0x6   :  { %15 = vsyncpa [#allocation9], 0 }
   0x7   :  { %16 = vsyncpa [#allocation4], 0 }
   0x8   :  { %18 = vsyncpa [#allocation4 + $0x1], 0  ;;  %s1642_s21 = smov 0   ;;  %s1644_s22 = smov 0  }
   0x9   :  { %s1646_s23 = smov 0   ;;  %s1648_s24 = smov 0  }
   0xa LB: > { %s1663_s25 = sadd.s32 4294967295, %s1595_s24   ;;  %s1158_s26 = sadd.s32 4294967294, %s1595_s24   ;;  %s1595_s24 = sphi %s1648_s24, %s2059_s24   ;;  %s1591_s23 = sphi %s1646_s23, %s2058_s23   ;;  %s1587_s22 = sphi %s1644_s22, %s2057_s22   ;;  %s1583_s21 = sphi %s1642_s21, %s2056_s21  }
   0xb   : > { %p44_p0 = scmp.ne.s32.totalorder %s1587_s22, %s1583_s21  ;;  %p45_p1 = scmp.eq.s32.totalorder %s1663_s25, 0 }
   0xc   : > { %p173_p2 = scmp.eq.s32.totalorder %s1663_s25, 1  ;;  %p179_p3 = scmp.eq.s32.totalorder %s1158_s26, 1 }
   0xd   : > { %p1672_p4 = por %p45_p1, %p44_p0  ;;  %p1159_p5 = scmp.ge.s32.totalorder %s1595_s24, 1 }
   0xe   : > { %p1677_p6 = por %p179_p3, %p44_p0  ;;  %p186_p7 = scmp.lt.s32.totalorder %s1595_s24, 3 }
   0xf   : > { %s2047_s1 = sld [smem:[#allocation15_spill]]  ;;  %s1597_s9 = smov [#allocation5]  }
  0x10   : > { %p1685_p8 = pnand %p1159_p5, %p186_p7  ;;  %s199_s10 = sshll.u32 %s1597_s9, 4  ;;  %s200_s10 = int_to_ptr.vmem [resolvable:$true] %s199_s10 }
  0x11   : > { %s2050_s3 = sld [smem:[#allocation16_spill]]  ;;  %s2041_s15 = smov 64  }
  0x12   : > { %p1331_p9 = pneg %p1685_p8  ;;  %s2042_s16 = smov 4  }
  0x13   : > { %s1600_s17 = smov [#allocation7]   ;;  %s1601_s19 = smov 128  }
  0x14   : > { %p1693_p10 = pnand %p1331_p9, %p45_p1  ;;  %s216_s18 = sshll.u32 %s1600_s17, 4  ;;  %s217_s18 = int_to_ptr.vmem [resolvable:$true] %s216_s18 }
  0x15   : > { %s197_s7 = sshll.u32 %s2047_s1, 4  ;;  %s1602_s20 = smov 8   ;;  %s198_s7 = int_to_ptr.hbm [resolvable:$true] %s197_s7 }
  0x16   : > { %1334 = dma.hbm_to_vmem [thread:$0]  (!%p1693_p10), %s198_s7, 1024, %s200_s10, [#allocation6], %s2041_s15, %s2041_s15, %s2042_s16  }
  0x17   : > { %s214_s14 = sshll.u32 %s2050_s3, 4  ;;  %s228_s30 = sshll.u32 %s2038_s4, 4  ;;  %s215_s14 = int_to_ptr.hbm [resolvable:$true] %s214_s14  ;;  %s229_s30 = int_to_ptr.hbm [resolvable:$true] %s228_s30 }
  0x18   : > { %1337 = dma.hbm_to_vmem [thread:$0]  (!%p1693_p10), %s215_s14, 256, %s217_s18, [#allocation6], %s1601_s19, %s1601_s19, %s1602_s20  }
  0x19   : > { %s1603_s7 = smov [#allocation8]   ;;  %s1717_s10 = sadd.s32 1, %s1595_s24  }
  0x1a   : > { %s230_s9 = sshll.u32 %s1603_s7, 4  ;;  %s28_s12 = ssub.s32 %s1595_s24, %s1717_s10  ;;  %s231_s9 = int_to_ptr.vmem [resolvable:$true] %s230_s9 }
  0x1b   : > { %1340 = dma.hbm_to_vmem [thread:$0]  (!%p1693_p10), %s229_s30, 1024, %s231_s9, [#allocation9], %s2041_s15, %s2041_s15, %s2042_s16  }
  0x1c   : > { %s31_s13 = sadd.s32 1, %s1591_s23  ;;  %p29_p12 = scmp.eq.s32.totalorder %s28_s12, 0 }
  0x1d   : > { %p38_p13 = scmp.ne.s32.totalorder %s1591_s23, %s1587_s22  ;;  %p39_p0 = scmp.eq.s32.totalorder %s1595_s24, 0 }
  0x1e   : > { %p1352_p3 = scmp.lt.s32.totalorder %s1595_s24, 2  ;;  %s247_s11 = sand.u32 1, %s1591_s23  }
  0x1f   : > { %s1727_s14 = scalar_select %p29_p12, %s1591_s23, %s31_s13  }
  0x20   : > { %p40_p5 = por %p39_p0, %p38_p13  ;;  %p1731_p7 = por %p173_p2, %p38_p13 }
  0x21   : > { %s1313_s18 = smul.u32 96, %s1595_s24  ;;  %s248_s13 = scalar_lea.sflag [#allocation3], %s247_s11 }
  0x22   : > { %s1312_s19 = smul.u32 96, %s247_s11  ;;  %p1740_p9 = pnand %p1352_p3, %p40_p5 }
  0x23   : > { %s257_s29 = scalar_lea.hbm %s2034_s0, %s1313_s18  ;;  %s1498_s26 = scalar_lea.hbm %s2034_s0, 192 }
  0x24   : > { %s258_s7 = sshll.u32 %s257_s29, 4  ;;  %s251_s9 = scalar_lea.vmem [#allocation2], %s1312_s19  ;;  %s259_s7 = int_to_ptr.hbm [resolvable:$true] %s258_s7 }
  0x25   : > { %s260_s12 = sshll.u32 %s251_s9, 4  ;;  %s1491_s15 = sshra.s32 %s259_s7, 4  ;;  %s261_s12 = int_to_ptr.vmem [resolvable:$true] %s260_s12  ;;  %s1492_s15 = int_to_ptr.hbm [resolvable:$true] %s1491_s15 }
  0x26   : > { %s1493_s16 = scalar_lea.hbm %s1492_s15, 96  ;;  %p1495_p10 = pneg %p1740_p9 }
  0x27   : > { %p1494_p2 = scmp.ne.s32.totalorder %s1492_s15, %s1493_s16  ;;  %p1499_p0 = scmp.lt.s32.totalorder %s1492_s15, %s2034_s0 }
  0x28   : > { %p1500_p3 = scmp.lt.s32.totalorder %s1498_s26, %s1493_s16 }
  0x29   : > { %p1496_p12 = pnand %p1495_p10, %p1494_p2 }
  0x2a   : > { %p1501_p5 = por %p1500_p3, %p1499_p0 }
  0x2b   : > { %p1497_p13 = pneg %p1496_p12 }
  0x2d   : > { %p1502_p11 = pnand %p1501_p5, %p1497_p13 }
  0x2f   : > { %1505 = shalt.err (!%p1502_p11)
}
  0x30   : > { %s2053_s11 = smov 4   ;;  %s2054_s19 = smov 64  }
  0x31   : > { %1344 = dma.hbm_to_vmem [thread:$0]  (!%p1740_p9), %s259_s7, 1536, %s261_s12, %s248_s13, %s2054_s19, %s2054_s19, %s2053_s11  }
  0x32   : > { %272 = sbr.rel (%p1685_p8) target bundleno = 543 (0x21f), region = 44  ;;  %s1760_s29 = sand.u32 (!%p1685_p8), 1, %s1587_s22  }
  0x33   : > { %s1314_s1 = smul.u32 (!%p1685_p8), 96, %s1760_s29  ;;  %s275_s3 = scalar_lea.sflag (!%p1685_p8), [#allocation3], %s1760_s29 }
  0x35   : > { %s1764_s15 = scalar_lea.vmem (!%p1685_p8), [#allocation2], %s1314_s1 }
  0x37   : > { %1566 = dma.done.wait (%p1672_p4), %s275_s3, 1536  }
  0x38   : > { %1568 = vsyncadd (%p1672_p4), %s275_s3, 4294965760 }
  0x39   : > { %1570 = dma.done.wait (%p45_p1), [#allocation6], 1280  }
  0x3a   : > { %1572 = vsyncadd (%p45_p1), [#allocation6], 4294966016 }
  0x3b   : > { %1574 = dma.done.wait (%p45_p1), [#allocation9], 1024  }
  0x3c   : > { %1576 = vsyncadd (%p45_p1), [#allocation9], 4294966272  ;;  %v1779_v0 = vld [vmem:[%s1764_s15 + $0x24] sm:$0xff]  ;;  %v335_v1 = vld [vmem:[%s1764_s15 + $0x2c] sm:$0xf]  ;;  %vm525_vm0 = vcmask 1046528  }
  0x3d   : > { %v1783_v2 = vld [vmem:[%s1764_s15 + $0x18] sm:$0xff]  ;;  %v399_v3 = vunpack.c.l.b16 %v335_v1  ;;  %v332_v4 = vld [vmem:[%s1764_s15 + $0x20] sm:$0xf]  ;;  %v341_v6 = vld [vmem:[%s1764_s15 + $0x44] sm:$0xf]  ;;  %v535_v10 = vrot.slane %v1779_v0, 1 }
  0x3e   : > { %v1787_v5 = vld [vmem:[%s1764_s15 + $0x3c] sm:$0xff]  ;;  %v398_v7 = vunpack.c.l.b16 %v332_v4  ;;  %v401_v8 = vunpack.c.l.b16 %v341_v6  ;;  %v532_v13 = vrot.slane %v1783_v2, 1  ;;  %v440_v15 = vshll.u32 %v1783_v2, 16  ;;  %s1604_s27 = smov 64   ;;  %v344_v32 = vld [vmem:[%s1764_s15 + $0x50] sm:$0xf] }
  0x3f   : > { %v1790_v9 = vpack.c.b16 %v399_v3, %v399_v3  ;;  %v476_v11 = vshll.u32 %v1787_v5, 16  ;;  %v474_v17 = vshrl.u32 %v1787_v5, 16  ;;  %v438_v19 = vshrl.u32 %v1783_v2, 16  ;;  %v326_v34 = vld [vmem:[%s1764_s15 + $0x8] sm:$0xf]  ;;  %v1818_v46 = vld [vmem:[%s1764_s15] sm:$0xff] }
  0x40   : > { %v406_v12 = vpack.c.b16 %v398_v7, %v398_v7  ;;  %v1795_v14 = vpack.c.b16 %v401_v8, %v401_v8  ;;  %v442_v22 = vrot.slane %v440_v15, 1  ;;  %v452_v29 = vshll.u32 %v1779_v0, 16  ;;  %v1811_v39 = vld [vmem:[%s1764_s15 + $0x48] sm:$0xff]  ;;  %s1605_s8 = smov 32   ;;  %s1606_s16 = smov 96  }
  0x41   : > { %v536_v16 = vrot.slane %v1790_v9, 1  ;;  %v478_v18 = vrot.slane %v476_v11, 1  ;;  %vm412_vm1 = vsmask.f32 7424  ;;  %v450_v33 = vshrl.u32 %v1779_v0, 16  ;;  %s1269_s9 = sshll.u32 %s1663_s25, 3 }
  0x42   : > { %v533_v20 = vrot.slane %v406_v12, 1  ;;  %v481_v21 = vshll.u32 %v1795_v14, 16  ;;  %v445_v23 = vshll.u32 %v406_v12, 16  ;;  %v588_v26 = vshrl.u32 %v406_v12, 16  ;;  %s1171_s12 = sshll.u32 %s1760_s29, 3  ;;  %s1054_s20 = scalar_lea.hbm %s2040_s6, %s1269_s9 }
  0x43   : > { %v537_v24 = vsel %vm525_vm0, %v535_v10, %v536_v16  ;;  %v479_v27 = vor.u32 %v478_v18, %v474_v17  ;;  %v443_v30 = vor.u32 %v442_v22, %v438_v19  ;;  %v585_v35 = vrot.slane %v438_v19, 1  ;;  %s322_s19 = scalar_lea.vmem [#allocation10], %s1171_s12  ;;  %s1058_s3 = sshll.u32 %s1054_s20, 4  ;;  %s1059_s3 = int_to_ptr.hbm [resolvable:$true] %s1058_s3 }
  0x44   : > { %556 = vrot.lane.b32.xlu1 %v537_v24, %s1604_s27  ;;  %v534_v25 = vsel %vm525_vm0, %v532_v13, %v533_v20  ;;  %v483_v28 = vrot.slane %v481_v21, 1  ;;  %v447_v31 = vrot.slane %v445_v23, 1  ;;  %v586_v36 = vrot.slane %v440_v15, 2  ;;  %s1056_s1 = sshll.u32 %s322_s19, 4  ;;  %s1535_s25 = sshra.s32 %s1059_s3, 4  ;;  %s1057_s1 = int_to_ptr.vmem [resolvable:$true] %s1056_s1  ;;  %s1536_s25 = int_to_ptr.hbm [resolvable:$true] %s1535_s25 }
  0x45   : > { %554 = vrot.lane.b32.xlu0 %v534_v25, %s1604_s27  ;;  %v590_v37 = vrot.slane %v588_v26, 1  ;;  %v591_v38 = vrot.slane %v445_v23, 2  ;;  %v454_v41 = vrot.slane %v452_v29, 1  ;;  %v402_v42 = vunpack.c.l.b16 %v344_v32  ;;  %v1852_v32 = vld [vmem:[%s1764_s15 + $0x30] sm:$0xff]  ;;  %s1541_s30 = scalar_lea.hbm %s2040_s6, 16  ;;  %p1542_p11 = scmp.lt.s32.totalorder %s1536_s25, %s2040_s6 }
  0x46   : > { %v484_v40 = vsel %vm412_vm1, %v479_v27, %v483_v28  ;;  %v541_v43 = vrot.slane %v1787_v5, 1  ;;  %v448_v44 = vsel %vm412_vm1, %v443_v30, %v447_v31  ;;  %v457_v45 = vshll.u32 %v1790_v9, 16 }
  0x47   : > { %v396_v47 = vunpack.c.l.b16 %v326_v34  ;;  %v542_v48 = vrot.slane %v1795_v14, 1  ;;  %v488_v49 = vshll.u32 %v1811_v39, 16  ;;  %vm566_vm2 = vsmask.f32 6400 }
  0x48   : > { %v587_v51 = vor.u32 %v586_v36, %v585_v35  ;;  %v592_v52 = vor.u32 %v591_v38, %v590_v37  ;;  %v1825_v53 = vpack.c.b16 %v402_v42, %v402_v42  ;;  %v455_v54 = vor.u32 %v454_v41, %v450_v33  ;;  %v347_v42 = vld [vmem:[%s1764_s15 + $0x5c] sm:$0xf] }
  0x49   : > { %v543_v50 = vsel %vm525_vm0, %v541_v43, %v542_v48  ;;  %v459_v55 = vrot.slane %v457_v45, 1  ;;  %v1828_v56 = vpack.c.b16 %v396_v47, %v396_v47  ;;  %v416_v57 = vshll.u32 %v1818_v46, 16 }
  0x4a   : > { %560 = vrot.lane.b32.xlu2 %v543_v50, %s1604_s27  ;;  %v612_v58 = vrot.slane %v474_v17, 1  ;;  %v613_v59 = vrot.slane %v476_v11, 2  ;;  %v615_v60 = vshrl.u32 %v1795_v14, 16  ;;  %v486_v61 = vshrl.u32 %v1811_v39, 16 }
  0x4b   : > { %v490_v62 = vrot.slane %v488_v49, 1  ;;  %v414_v63 = vshrl.u32 %v1818_v46, 16  ;;  %v618_v1 = vrot.slane %v481_v21, 2  ;;  %v593_v3 = vsel %vm566_vm2, %v587_v51, %v592_v52  ;;  %v1870_v52 = vld [vmem:[%s1764_s15 + $0x54] sm:$0xff] }
  0x4c   : > { %519 = vrot.lane.b32.xlu1 %v484_v40, %s1605_s8  ;;  %v493_v4 = vshll.u32 %v1825_v53, 16  ;;  %v614_v6 = vor.u32 %v613_v59, %v612_v58  ;;  %v617_v7 = vrot.slane %v615_v60, 1  ;;  %v460_v8 = vsel %vm412_vm1, %v455_v54, %v459_v55  ;;  %v1873_v58 = vld [vmem:[%s1764_s15 + $0xc] sm:$0xff] }
  0x4d   : > { %513 = vrot.lane.b32.xlu0 %v448_v44, %s1605_s8  ;;  %v418_v10 = vrot.slane %v416_v57, 1  ;;  %v421_v11 = vshll.u32 %v1828_v56, 16  ;;  %v594_v12 = vrot.slane %v450_v33, 1  ;;  %v595_v14 = vrot.slane %v452_v29, 2 }
  0x4e   : > { %v619_v13 = vor.u32 %v618_v1, %v617_v7  ;;  %v597_v15 = vshrl.u32 %v1790_v9, 16  ;;  %v600_v16 = vrot.slane %v457_v45, 2  ;;  %v491_v17 = vor.u32 %v490_v62, %v486_v61  ;;  %v338_v9 = vld [vmem:[%s1764_s15 + $0x38] sm:$0xf]  ;;  %v329_v45 = vld [vmem:[%s1764_s15 + $0x14] sm:$0xf] }
  0x4f   : > { %v495_v18 = vrot.slane %v493_v4, 1  ;;  %v570_v19 = vshrl.u32 %v1828_v56, 16  ;;  %v419_v22 = vor.u32 %v418_v10, %v414_v63  ;;  %v423_v23 = vrot.slane %v421_v11, 1  ;;  %s1044_s15 = scalar_lea.sflag [#allocation4], %s1760_s29 }
  0x50   : > { %v620_v20 = vsel %vm566_vm2, %v614_v6, %v619_v13  ;;  %v599_v21 = vrot.slane %v597_v15, 1  ;;  %v596_v24 = vor.u32 %v595_v14, %v594_v12  ;;  %v567_v26 = vrot.slane %v414_v63, 1  ;;  %v1286_v15 = vld [vmem:[#allocation5 + $0x30] sm:$0xff] }
  0x51   : > { %v496_v27 = vsel %vm412_vm1, %v491_v17, %v495_v18  ;;  %v568_v28 = vrot.slane %v416_v57, 2  ;;  %v572_v29 = vrot.slane %v570_v19, 1  ;;  %v573_v30 = vrot.slane %v421_v11, 2 }
  0x52   : > { %649 = vrot.lane.b32.xlu2 %v620_v20, %s1606_s16  ;;  %v601_v25 = vor.u32 %v600_v16, %v599_v21  ;;  %v424_v31 = vsel %vm412_vm1, %v419_v22, %v423_v23  ;;  %v400_v33 = vunpack.c.l.b16 %v338_v9  ;;  %v544_v37 = vrot.slane %v1811_v39, 1 }
  0x53   : > { %v569_v35 = vor.u32 %v568_v28, %v567_v26  ;;  %v574_v36 = vor.u32 %v573_v30, %v572_v29  ;;  %v545_v38 = vrot.slane %v1825_v53, 1  ;;  %v464_v41 = vshll.u32 %v1852_v32, 16 }
  0x54   : > { %643 = vrot.lane.b32.xlu1 %v593_v3, %s1606_s16  ;;  %v602_v34 = vsel %vm566_vm2, %v596_v24, %v601_v25  ;;  %v408_v40 = vpack.c.b16 %v400_v33, %v400_v33  ;;  %v526_v43 = vrot.slane %v1818_v46, 1  ;;  %v527_v44 = vrot.slane %v1828_v56, 1 }
  0x55   : > { %515 = vrot.lane.b32.xlu0 %v460_v8, %s1605_s8  ;;  %v624_v47 = vshrl.u32 %v1825_v53, 16  ;;  %v575_v48 = vsel %vm566_vm2, %v569_v35, %v574_v36  ;;  %v546_v50 = vsel %vm525_vm0, %v544_v37, %v545_v38  ;;  %v462_v51 = vshrl.u32 %v1852_v32, 16  ;;  %v1284_v37 = vld [vmem:[#allocation5 + $0x20] sm:$0xff] }
  0x56   : > { %v403_v54 = vunpack.c.l.b16 %v347_v42  ;;  %v466_v55 = vrot.slane %v464_v41, 1  ;;  %v469_v57 = vshll.u32 %v408_v40, 16  ;;  %v397_v59 = vunpack.c.l.b16 %v329_v45  ;;  %v1283_v45 = vld [vmem:[#allocation5 + $0x18] sm:$0xff] }
  0x57   : > { %v528_v60 = vsel %vm525_vm0, %v526_v43, %v527_v44  ;;  %v621_v56 = vrot.slane %v486_v61, 1  ;;  %v622_v53 = vrot.slane %v488_v49, 2  ;;  %v626_v62 = vrot.slane %v624_v47, 1  ;;  %v1287_v49 = vld [vmem:[#allocation5 + $0x38] sm:$0xff] }
  0x58   : > { %v627_v63 = vrot.slane %v493_v4, 2  ;;  %v538_v1 = vrot.slane %v1852_v32, 1  ;;  %v539_v3 = vrot.slane %v408_v40, 1  ;;  %v1883_v6 = vpack.c.b16 %v403_v54, %v403_v54  ;;  %1297 = vmatpush.bf16.msra.mxu3 %v1287_v49  ;;  %1296 = vmatpush.bf16.msra.mxu2 %v1287_v49 }
  0x59   : > { %v500_v7 = vshll.u32 %v1870_v52, 16  ;;  %v467_v8 = vor.u32 %v466_v55, %v462_v51  ;;  %v471_v10 = vrot.slane %v469_v57, 1  ;;  %v1886_v11 = vpack.c.b16 %v397_v59, %v397_v59  ;;  %782 = vmatpush.bf16.msra.mxu0 %v1287_v49 }
  0x5a   : > { %645 = vrot.lane.b32.xlu2 %v602_v34, %s1606_s16  ;;  %v428_v61 = vshll.u32 %v1873_v58, 16  ;;  %v623_v4 = vor.u32 %v622_v53, %v621_v56  ;;  %v628_v12 = vor.u32 %v627_v63, %v626_v62  ;;  %v606_v13 = vshrl.u32 %v408_v40, 16 }
  0x5b   : > { %v498_v14 = vshrl.u32 %v1870_v52, 16  ;;  %v540_v16 = vsel %vm525_vm0, %v538_v1, %v539_v3  ;;  %v502_v17 = vrot.slane %v500_v7, 1  ;;  %v505_v18 = vshll.u32 %v1883_v6, 16 }
  0x5c   : > { %521 = vrot.lane.b32.xlu1 %v496_v27, %s1605_s8  ;;  %v426_v19 = vshrl.u32 %v1873_v58, 16  ;;  %v472_v20 = vsel %vm412_vm1, %v467_v8, %v471_v10  ;;  %v430_v21 = vrot.slane %v428_v61, 1  ;;  %v433_v22 = vshll.u32 %v1886_v11, 16  ;;  %1299 = vmatpush.bf16.msra.mxu3 %v1286_v15  ;;  %v1285_v27 = vld [vmem:[#allocation5 + $0x28] sm:$0xff]  ;;  %v1282_v10 = vld [vmem:[#allocation5 + $0x10] sm:$0xff] }
  0x5d   : > { %509 = vrot.lane.b32.xlu0 %v424_v31, %s1605_s8  ;;  %v603_v23 = vrot.slane %v462_v51, 1  ;;  %v629_v9 = vsel %vm566_vm2, %v623_v4, %v628_v12  ;;  %v604_v24 = vrot.slane %v464_v41, 2  ;;  %v608_v25 = vrot.slane %v606_v13, 1  ;;  %1298 = vmatpush.bf16.msra.mxu2 %v1286_v15 }
  0x5e   : > { %v609_v26 = vrot.slane %v469_v57, 2  ;;  %v503_v28 = vor.u32 %v502_v17, %v498_v14  ;;  %v507_v29 = vrot.slane %v505_v18, 1  ;;  %v579_v30 = vshrl.u32 %v1886_v11, 16  ;;  %783 = vmatpush.bf16.msra.mxu0 %v1286_v15 }
  0x5f   : > { %v431_v31 = vor.u32 %v430_v21, %v426_v19  ;;  %v435_v33 = vrot.slane %v433_v22, 1  ;;  %v605_v34 = vor.u32 %v604_v24, %v603_v23  ;;  %v576_v36 = vrot.slane %v426_v19, 1 }
  0x60   : > { %v610_v35 = vor.u32 %v609_v26, %v608_v25  ;;  %1301 = vmatpush.bf16.msra.mxu3 %v1285_v27  ;;  %v508_v38 = vsel %vm412_vm1, %v503_v28, %v507_v29  ;;  %v577_v40 = vrot.slane %v428_v61, 2  ;;  %v581_v41 = vrot.slane %v579_v30, 1 }
  0x61   : > { %v582_v42 = vrot.slane %v433_v22, 2  ;;  %1300 = vmatpush.bf16.msra.mxu2 %v1285_v27  ;;  %v436_v43 = vsel %vm412_vm1, %v431_v31, %v435_v33  ;;  %v548_v51 = vrot.slane %v1883_v6, 1  ;;  %v529_v54 = vrot.slane %v1873_v58, 1 }
  0x62   : > { %550 = vrot.lane.b32.xlu2 %v528_v60, %s1604_s27  ;;  %784 = vmatpush.bf16.msra.mxu0 %v1285_v27  ;;  %v611_v44 = vsel %vm566_vm2, %v605_v34, %v610_v35  ;;  %v578_v47 = vor.u32 %v577_v40, %v576_v36  ;;  %v530_v55 = vrot.slane %v1886_v11, 1  ;;  %v633_v57 = vshrl.u32 %v1883_v6, 16  ;;  %v1281_v11 = vld [vmem:[#allocation5 + $0x8] sm:$0xff] }
  0x63   : > { %v630_v56 = vrot.slane %v498_v14, 1  ;;  %v631_v62 = vrot.slane %v500_v7, 2  ;;  %v636_v1 = vrot.slane %v505_v18, 2  ;;  %v1280_v7 = vld [vmem:[#allocation5] sm:$0xff]  ;;  %vm655_vm3 = vcmask 261120  }
  0x64   : > { %639 = vrot.lane.b32.xlu1 %v575_v48, %s1606_s16  ;;  %1303 = vmatpush.bf16.msra.mxu3 %v1284_v37  ;;  %v583_v48 = vor.u32 %v582_v42, %v581_v41  ;;  %v531_v53 = vsel %vm525_vm0, %v529_v54, %v530_v55  ;;  %v635_v63 = vrot.slane %v633_v57, 1  ;;  %vm672_vm4 = vcmask 523264  }
  0x65   : > { %562 = vrot.lane.b32.xlu0 %v546_v50, %s1604_s27  ;;  %1302 = vmatpush.bf16.msra.mxu2 %v1284_v37  ;;  %v547_v50 = vrot.slane %v1870_v52, 1  ;;  %v632_v3 = vor.u32 %v631_v62, %v630_v56  ;;  %vm689_vm5 = vcmask 785408   ;;  %vm965_vm6 = vcmask 1041409  }
  0x66   : > { %785 = vmatpush.bf16.msra.mxu0 %v1284_v37  ;;  %v584_v59 = vsel %vm566_vm2, %v578_v47, %v583_v48  ;;  %v637_v6 = vor.u32 %v636_v1, %v635_v63  ;;  %v1294_v63 = vld [vmem:[#allocation8 + $0x30] sm:$0xff]  ;;  %vm967_vm7 = vcmask 1042434   ;;  %vm969_vm8 = vcmask 1043459  }
  0x67   : > { %v549_v60 = vsel %vm525_vm0, %v547_v50, %v548_v51  ;;  %vm971_vm9 = vcmask 1044484   ;;  %vm973_vm10 = vcmask 1045509   ;;  %vm975_vm11 = vcmask 1046534  }
  0x68   : > { %1305 = vmatpush.bf16.msra.mxu3 %v1283_v45  ;;  %v638_v8 = vsel %vm566_vm2, %v632_v3, %v637_v6  ;;  %v1959_v3 = vld [vmem:[%s2036_s2] ss:$0 sm:$0xff]  ;;  %v1293_v6 = vld [vmem:[#allocation8 + $0x28] sm:$0xff]  ;;  %vm977_vm12 = vcmask 1047559  }
  0x69   : > { %1304 = vmatpush.bf16.msra.mxu2 %v1283_v45 }
  0x6a   : > { %651 = vrot.lane.b32.xlu2 %v629_v9, %s1606_s16  ;;  %786 = vmatpush.bf16.msra.mxu0 %v1283_v45 }
  0x6c   : > { %558 = vrot.lane.b32.xlu1 %v540_v16, %s1604_s27  ;;  %1307 = vmatpush.bf16.msra.mxu3 %v1282_v10 }
  0x6d   : > { %517 = vrot.lane.b32.xlu0 %v472_v20, %s1605_s8  ;;  %1306 = vmatpush.bf16.msra.mxu2 %v1282_v10 }
  0x6e   : > { %787 = vmatpush.bf16.msra.mxu0 %v1282_v10 }
  0x70   : > { %1309 = vmatpush.bf16.msra.mxu3 %v1281_v11 }
  0x71   : > { %1308 = vmatpush.bf16.msra.mxu2 %v1281_v11 }
  0x72   : > { %647 = vrot.lane.b32.xlu2 %v611_v44, %s1606_s16  ;;  %788 = vmatpush.bf16.msra.mxu0 %v1281_v11 }
  0x74   : > { %523 = vrot.lane.b32.xlu1 %v508_v38, %s1605_s8  ;;  %1311 = vmatpush.bf16.msra.mxu3 %v1280_v7 }
  0x75   : > { %511 = vrot.lane.b32.xlu0 %v436_v43, %s1605_s8  ;;  %1310 = vmatpush.bf16.msra.mxu2 %v1280_v7 }
  0x76   : > { %789 = vmatpush.bf16.msra.mxu0 %v1280_v7 }
  0x7a   : > { %552 = vrot.lane.b32.xlu2 %v531_v53, %s1604_s27  ;;  %v1295_v53 = vld [vmem:[#allocation8 + $0x38] sm:$0xff] }
  0x7b   : > { %1029 = vmatpush.bf16.msra.mxu1 %v1295_v53 }
  0x7c   : > { %641 = vrot.lane.b32.xlu1 %v584_v59, %s1606_s16 }
  0x7d   : > { %564 = vrot.lane.b32.xlu0 %v549_v60, %s1604_s27  ;;  %s1537_s27 = scalar_lea.hbm %s1536_s25, 8 }
  0x7e   : > { %p1538_p1 = scmp.ne.s32.totalorder %s1536_s25, %s1537_s27  ;;  %p1543_p9 = scmp.lt.s32.totalorder %s1541_s30, %s1537_s27 }
  0x7f   : > { %1030 = vmatpush.bf16.msra.mxu1 %v1294_v63 }
  0x80   : > { %p1539_p4 = pnand %p1538_p1, %p1731_p7  ;;  %p1544_p2 = por %p1543_p9, %p1542_p11 }
  0x82   : > { %653 = vrot.lane.b32.xlu2 %v638_v8, %s1606_s16  ;;  %p1540_p8 = pneg %p1539_p4 }
  0x83   : > { %1031 = vmatpush.bf16.msra.mxu1 %v1293_v6 }
  0x84   : > { %p1545_p10 = pnand %p1544_p2, %p1540_p8 }
  0xa4   : > { %v561_v61 = vpop.permute.xlu2 %560 }
  0xac   : > { %v650_v49 = vpop.permute.xlu2 %649 }
  0xb4   : > { %v646_v13 = vpop.permute.xlu2 %645 }
  0xb6   : > { %v557_v4 = vpop.permute.xlu1 %556 }
  0xb7   : > { %v555_v12 = vpop.permute.xlu0 %554 }
  0xbc   : > { %v551_v22 = vpop.permute.xlu2 %550 }
  0xbe   : > { %v520_v14 = vpop.permute.xlu1 %519 }
  0xbf   : > { %v667_v15 = vsel %vm655_vm3, %v1787_v5, %v520_v14  ;;  %v514_v16 = vpop.permute.xlu0 %513 }
  0xc0   : > { %v684_v17 = vsel %vm672_vm4, %v667_v15, %v561_v61  ;;  %v661_v19 = vsel %vm655_vm3, %v1783_v2, %v514_v16 }
  0xc1   : > { %v706_v18 = vsel %vm689_vm5, %v684_v17, %v650_v49  ;;  %v678_v21 = vsel %vm672_vm4, %v661_v19, %v555_v12 }
  0xc2   : > { %815 = vmatmul.bf16.vlgmr.msra.gmra.mxu3 %v706_v18 }
  0xc4   : > { %v652_v5 = vpop.permute.xlu2 %651 }
  0xc6   : > { %v644_v20 = vpop.permute.xlu1 %643 }
  0xc7   : > { %v516_v23 = vpop.permute.xlu0 %515  ;;  %v697_v9 = vsel %vm689_vm5, %v678_v21, %v644_v20 }
  0xc8   : > { %800 = vmatmul.bf16.vlgmr.msra.gmra.mxu2 %v697_v9  ;;  %v663_v26 = vsel %vm655_vm3, %v1779_v0, %v516_v23  ;;  %v1291_v9 = vld [vmem:[#allocation8 + $0x18] sm:$0xff] }
  0xc9   : > { %v680_v28 = vsel %vm672_vm4, %v663_v26, %v557_v4  ;;  %v1292_v4 = vld [vmem:[#allocation8 + $0x20] sm:$0xff] }
  0xca   : > { %v700_v34 = vsel %vm689_vm5, %v680_v28, %v646_v13  ;;  %1032 = vmatpush.bf16.msra.mxu1 %v1292_v4 }
  0xce   : > { %v522_v24 = vpop.permute.xlu1 %521  ;;  %1033 = vmatpush.bf16.msra.mxu1 %v1291_v9 }
  0xcf   : > { %v510_v25 = vpop.permute.xlu0 %509  ;;  %v669_v30 = vsel %vm655_vm3, %v1811_v39, %v522_v24 }
  0xd0   : > { %v657_v27 = vsel %vm655_vm3, %v1818_v46, %v510_v25  ;;  %v648_v46 = vpop.permute.xlu2 %647 }
  0xd1   : > { %v674_v2 = vsel %vm672_vm4, %v657_v27, %v551_v22  ;;  %v1970_v22 = vld [vmem:[#allocation7 + $0x8] sm:$0xff]  ;;  %v1975_v27 = vld [vmem:[#allocation7] sm:$0xff] }
  0xd6   : > { %v640_v29 = vpop.permute.xlu1 %639 }
  0xd7   : > { %v563_v31 = vpop.permute.xlu0 %562  ;;  %v691_v33 = vsel %vm689_vm5, %v674_v2, %v640_v29 }
  0xd8   : > { %v686_v35 = vsel %vm672_vm4, %v669_v30, %v563_v31  ;;  %790 = vmatmul.bf16.vlgmr.msra.gmra.mxu0 %v691_v33  ;;  %805 = vmatmul.bf16.gmra.mxu2 %v700_v34  ;;  %v553_v40 = vpop.permute.xlu2 %552 }
  0xd9   : > { %v709_v0 = vsel %vm689_vm5, %v686_v35, %v652_v5  ;;  %v1290_v35 = vld [vmem:[#allocation8 + $0x10] sm:$0xff] }
  0xda   : > { %820 = vmatmul.bf16.gmra.mxu3 %v709_v0  ;;  %1034 = vmatpush.bf16.msra.mxu1 %v1290_v35 }
  0xde   : > { %v559_v36 = vpop.permute.xlu1 %558 }
  0xdf   : > { %v518_v37 = vpop.permute.xlu0 %517 }
  0xe0   : > { %v665_v38 = vsel %vm655_vm3, %v1852_v32, %v518_v37  ;;  %v654_v48 = vpop.permute.xlu2 %653 }
  0xe1   : > { %v682_v39 = vsel %vm672_vm4, %v665_v38, %v559_v36 }
  0xe2   : > { %v703_v43 = vsel %vm689_vm5, %v682_v39, %v648_v46  ;;  %v1289_v39 = vld [vmem:[#allocation8 + $0x8] sm:$0xff] }
  0xe3   : > { %1035 = vmatpush.bf16.msra.mxu1 %v1289_v39 }
  0xe6   : > { %v524_v41 = vpop.permute.xlu1 %523 }
  0xe7   : > { %v512_v42 = vpop.permute.xlu0 %511  ;;  %v671_v50 = vsel %vm655_vm3, %v1870_v52, %v524_v41 }
  0xe8   : > { %810 = vmatmul.bf16.gmra.mxu2 %v703_v43  ;;  %v659_v44 = vsel %vm655_vm3, %v1873_v58, %v512_v42 }
  0xe9   : > { %v676_v45 = vsel %vm672_vm4, %v659_v44, %v553_v40 }
  0xee   : > { %v642_v47 = vpop.permute.xlu1 %641 }
  0xef   : > { %v565_v51 = vpop.permute.xlu0 %564  ;;  %v694_v32 = vsel %vm689_vm5, %v676_v45, %v642_v47 }
  0xf0   : > { %v688_v54 = vsel %vm672_vm4, %v671_v50, %v565_v51  ;;  %795 = vmatmul.bf16.gmra.mxu0 %v694_v32  ;;  %v1288_v51 = vld [vmem:[#allocation8] sm:$0xff] }
  0xf1   : > { %v712_v55 = vsel %vm689_vm5, %v688_v54, %v654_v48  ;;  %1036 = vmatpush.bf16.msra.mxu1 %v1288_v51 }
  0xf2   : > { %825 = vmatmul.bf16.gmra.mxu3 %v712_v55 }
 0x145   : > { %v816_v57 = vpop.f32.mrf.mxu3 }
 0x146   : > { %v817_v18 = vadd.f32 %v1959_v3, %v816_v57 }
 0x148   : > { %v841_v2 = vmax.f32 %v817_v18, 0.0 }
 0x14a   : > { %v859_v41 = vadd.f32 %v1975_v27, %v841_v2 }
 0x14b   : > { %v801_v59 = vpop.f32.mrf.mxu2 }
 0x14c   : > { %v802_v11 = vadd.f32 %v1959_v3, %v801_v59 }
 0x14d   : > { %v818_v58 = vpop.f32.mrf.mxu3 }
 0x14e   : > { %v819_v12 = vadd.f32 %v1959_v3, %v818_v58  ;;  %v835_v19 = vmax.f32 %v802_v11, 0.0 }
 0x150   : > { %v842_v24 = vmax.f32 %v819_v12, 0.0  ;;  %v853_v29 = vadd.f32 %v1975_v27, %v835_v19 }
 0x152   : > { %v860_v0 = vadd.f32 %v1970_v22, %v842_v24 }
 0x153   : > { %v803_v60 = vpop.f32.mrf.mxu2 }
 0x154   : > { %v804_v8 = vadd.f32 %v1959_v3, %v803_v60  ;;  %v900_v45 = vmax.f32 %v859_v41, %v860_v0 }
 0x155   : > { %v791_v56 = vpop.f32.mrf.mxu0 }
 0x156   : > { %v792_v7 = vadd.f32 %v1959_v3, %v791_v56  ;;  %v836_v13 = vmax.f32 %v804_v8, 0.0  ;;  %v901_v60 = vrot.slane %v900_v45, 4 }
 0x158   : > { %v831_v20 = vmax.f32 %v792_v7, 0.0  ;;  %v854_v25 = vadd.f32 %v1970_v22, %v836_v13  ;;  %v902_v7 = vmax.f32 %v900_v45, %v901_v60 }
 0x15a   : > { %v849_v30 = vadd.f32 %v1975_v27, %v831_v20  ;;  %v879_v46 = vmax.f32 %v853_v29, %v854_v25  ;;  %v903_v19 = vrot.slane %v902_v7, 2 }
 0x15b   : > { %v806_v62 = vpop.f32.mrf.mxu2 }
 0x15c   : > { %v807_v14 = vadd.f32 %v1959_v3, %v806_v62  ;;  %v880_v47 = vrot.slane %v879_v46, 4 }
 0x15d   : > { %v821_v1 = vpop.f32.mrf.mxu3  ;;  %v793_v52 = vpop.f32.mrf.mxu0 }
 0x15e   : > { %v794_v10 = vadd.f32 %v1959_v3, %v793_v52  ;;  %v822_v23 = vadd.f32 %v1959_v3, %v821_v1  ;;  %v837_v5 = vmax.f32 %v807_v14, 0.0  ;;  %v881_v58 = vmax.f32 %v879_v46, %v880_v47 }
 0x160   : > { %v832_v15 = vmax.f32 %v794_v10, 0.0  ;;  %v843_v34 = vmax.f32 %v822_v23, 0.0  ;;  %v855_v36 = vadd.f32 %v1975_v27, %v837_v5 }
 0x162   : > { %v850_v26 = vadd.f32 %v1970_v22, %v832_v15  ;;  %v861_v43 = vadd.f32 %v1975_v27, %v843_v34 }
 0x163   : > { %v808_v61 = vpop.f32.mrf.mxu2 }
 0x164   : > { %v809_v49 = vadd.f32 %v1959_v3, %v808_v61  ;;  %v865_v37 = vmax.f32 %v849_v30, %v850_v26  ;;  %v882_v61 = vrot.slane %v881_v58, 2 }
 0x165   : > { %v823_v16 = vpop.f32.mrf.mxu3 }
 0x166   : > { %v824_v17 = vadd.f32 %v1959_v3, %v823_v16  ;;  %v838_v21 = vmax.f32 %v809_v49, 0.0  ;;  %v866_v48 = vrot.slane %v865_v37, 4  ;;  %v883_v20 = vmax.f32 %v881_v58, %v882_v61 }
 0x168   : > { %v844_v28 = vmax.f32 %v824_v17, 0.0  ;;  %v856_v31 = vadd.f32 %v1970_v22, %v838_v21  ;;  %v867_v56 = vmax.f32 %v865_v37, %v866_v48 }
 0x16a   : > { %v862_v40 = vadd.f32 %v1970_v22, %v844_v28  ;;  %v886_v42 = vmax.f32 %v855_v36, %v856_v31  ;;  %v868_v49 = vrot.slane %v867_v56, 2  ;;  %v904_v31 = vmax.f32 %v902_v7, %v903_v19 }
 0x16b   : > { %v811_v33 = vpop.f32.mrf.mxu2 }
 0x16c   : > { %v812_v44 = vadd.f32 %v1959_v3, %v811_v33  ;;  %v907_v50 = vmax.f32 %v861_v43, %v862_v40  ;;  %v887_v32 = vrot.slane %v886_v42, 4  ;;  %v869_v21 = vmax.f32 %v867_v56, %v868_v49 }
 0x16d   : > { %v796_v38 = vpop.f32.mrf.mxu0  ;;  %v884_v33 = vrot.slane %v883_v20, 1 }
 0x16e   : > { %v797_v54 = vadd.f32 %v1959_v3, %v796_v38  ;;  %v839_v57 = vmax.f32 %v812_v44, 0.0  ;;  %v908_v63 = vrot.slane %v907_v50, 4  ;;  %v888_v52 = vmax.f32 %v886_v42, %v887_v32 }
 0x16f   : > { %v870_v34 = vrot.slane %v869_v21, 1  ;;  %v905_v42 = vrot.slane %v904_v31, 1  ;;  %v885_v44 = vmax.f32 %v883_v20, %v884_v33 }
 0x170   : > { %v833_v6 = vmax.f32 %v797_v54, 0.0  ;;  %v857_v10 = vadd.f32 %v1975_v27, %v839_v57  ;;  %v909_v12 = vmax.f32 %v907_v50, %v908_v63  ;;  %v889_v15 = vrot.slane %v888_v52, 2 }
 0x171   : > { %v906_v54 = vmax.f32 %v904_v31, %v905_v42 }
 0x172   : > { %v851_v16 = vadd.f32 %v1975_v27, %v833_v6  ;;  %v910_v24 = vrot.slane %v909_v12, 2  ;;  %v890_v28 = vmax.f32 %v888_v52, %v889_v15 }
 0x173   : > { %v813_v55 = vpop.f32.mrf.mxu2 }
 0x174   : > { %v814_v59 = vadd.f32 %v1959_v3, %v813_v55  ;;  %v911_v0 = vmax.f32 %v909_v12, %v910_v24  ;;  %v891_v38 = vrot.slane %v890_v28, 1 }
 0x175   : > { %v826_v53 = vpop.f32.mrf.mxu3  ;;  %v798_v62 = vpop.f32.mrf.mxu0 }
 0x176   : > { %v840_v1 = vmax.f32 %v814_v59, 0.0  ;;  %v799_v8 = vadd.f32 %v1959_v3, %v798_v62  ;;  %v827_v14 = vadd.f32 %v1959_v3, %v826_v53  ;;  %v912_v45 = vrot.slane %v911_v0, 1 }
 0x177   : > { %v892_v48 = vmax.f32 %v890_v28, %v891_v38 }
 0x178   : > { %v858_v11 = vadd.f32 %v1970_v22, %v840_v1  ;;  %v834_v4 = vmax.f32 %v799_v8, 0.0  ;;  %v845_v5 = vmax.f32 %v827_v14, 0.0  ;;  %v926_v1 = vpack.c.bf16 %v906_v54, %v906_v54 }
 0x179   : > { %v924_v60 = vpack.c.bf16 %v892_v48, %v892_v48 }
 0x17a   : > { %v893_v13 = vmax.f32 %v857_v10, %v858_v11  ;;  %v852_v17 = vadd.f32 %v1970_v22, %v834_v4  ;;  %v863_v36 = vadd.f32 %v1975_v27, %v845_v5  ;;  %v923_v27 = vpack.c.bf16 %v885_v44, %v885_v44 }
 0x17b   : > { %v960_v10 = vunpack.c.l.b16 %v924_v60  ;;  %v962_v4 = vunpack.c.l.b16 %v926_v1 }
 0x17c   : > { %v894_v18 = vrot.slane %v893_v13, 4  ;;  %v872_v23 = vmax.f32 %v851_v16, %v852_v17  ;;  %v959_v52 = vunpack.c.l.b16 %v923_v27 }
 0x17d   : > { %v828_v9 = vpop.f32.mrf.mxu3 }
 0x17e   : > { %v895_v25 = vmax.f32 %v893_v13, %v894_v18  ;;  %v829_v26 = vadd.f32 %v1959_v3, %v828_v9  ;;  %v873_v2 = vrot.slane %v872_v23, 4  ;;  %v871_v3 = vmax.f32 %v869_v21, %v870_v34  ;;  %v1400_v21 = vld [vmem:[%s2039_s5] ss:$0 sm:$0xff] }
 0x180   : > { %v896_v29 = vrot.slane %v895_v25, 2  ;;  %v846_v30 = vmax.f32 %v829_v26, 0.0  ;;  %v874_v35 = vmax.f32 %v872_v23, %v873_v2  ;;  %v921_v55 = vpack.c.bf16 %v871_v3, %v871_v3 }
 0x182   : > { %v897_v46 = vmax.f32 %v895_v25, %v896_v29  ;;  %v864_v37 = vadd.f32 %v1970_v22, %v846_v30  ;;  %v875_v40 = vrot.slane %v874_v35, 2  ;;  %v913_v22 = vmax.f32 %v911_v0, %v912_v45 }
 0x183   : > { %v957_v62 = vunpack.c.l.b16 %v921_v55 }
 0x184   : > { %v898_v39 = vrot.slane %v897_v46, 1  ;;  %v914_v41 = vmax.f32 %v863_v36, %v864_v37  ;;  %v876_v43 = vmax.f32 %v874_v35, %v875_v40  ;;  %v927_v8 = vpack.c.bf16 %v913_v22, %v913_v22 }
 0x186   : > { %v915_v47 = vrot.slane %v914_v41, 4  ;;  %v877_v50 = vrot.slane %v876_v43, 1  ;;  %v899_v51 = vmax.f32 %v897_v46, %v898_v39  ;;  %v963_v14 = vunpack.c.l.b16 %v927_v8 }
 0x188   : > { %v916_v32 = vmax.f32 %v914_v41, %v915_v47  ;;  %v878_v57 = vmax.f32 %v876_v43, %v877_v50  ;;  %v925_v56 = vpack.c.bf16 %v899_v51, %v899_v51 }
 0x18a   : > { %v917_v59 = vrot.slane %v916_v32, 2  ;;  %v922_v58 = vpack.c.bf16 %v878_v57, %v878_v57  ;;  %v961_v7 = vunpack.c.l.b16 %v925_v56 }
 0x18c   : > { %v918_v53 = vmax.f32 %v916_v32, %v917_v59  ;;  %v958_v63 = vunpack.c.l.b16 %v922_v58 }
 0x18e   : > { %v919_v6 = vrot.slane %v918_v53, 1  ;;  %v966_v11 = vsel %vm965_vm6, %v958_v63, %v957_v62 }
 0x18f   : > { %v968_v49 = vsel %vm967_vm7, %v959_v52, %v966_v11 }
 0x190   : > { %v920_v61 = vmax.f32 %v918_v53, %v919_v6  ;;  %v970_v12 = vsel %vm969_vm8, %v960_v10, %v968_v49 }
 0x191   : > { %v972_v15 = vsel %vm971_vm9, %v961_v7, %v970_v12 }
 0x192   : > { %v928_v13 = vpack.c.bf16 %v920_v61, %v920_v61  ;;  %v974_v16 = vsel %vm973_vm10, %v962_v4, %v972_v15 }
 0x193   : > { %v976_v18 = vsel %vm975_vm11, %v963_v14, %v974_v16 }
 0x194   : > { %v964_v17 = vunpack.c.l.b16 %v928_v13 }
 0x196   : > { %v978_v19 = vsel %vm977_vm12, %v964_v17, %v976_v18 }
 0x197   : > { %v979_v20 = vpack.c.b16 %v978_v19, %v978_v19 }
 0x199   : > { %1037 = vmatmul.bf16.vlgmr.msra.gmra.mxu1 %v979_v20 }
 0x216   : > { %v1038_v23 = vpop.f32.mrf.mxu1 }
 0x217   : > { %v1039_v9 = vadd.f32 %v1400_v21, %v1038_v23 }
 0x219   : > { %1042 = vst [vmem:[%s322_s19] sm:$0xff] %v1039_v9 }
 0x21a   : > { %1548 = shalt.err (!%p1545_p10)
}
 0x21b   : > { %1329 = dma.vmem_to_hbm [thread:$0]  (%p1731_p7), %s1057_s1, 128, %s1059_s3, %s1044_s15  }
 0x21e   : > { %v1040_v24 = vpop.f32.mrf.mxu1 }
 0x21f PF: > { %s1070_s29 = sand.u32 1, %s1583_s21   ;;  %p2055_p12 = scmp.ge.s32.totalorder %s1595_s24, 2 }
 0x220   : > { %s1071_s12 = scalar_lea.sflag [#allocation4], %s1070_s29 }
 0x221   : > { %p1346_p13 = pnand %p2055_p12, %p1677_p6 }
 0x223   : > { %p1347_p0 = pneg %p1346_p13 }
 0x225   : > { %1578 = dma.done.wait (%p1347_p0), %s1071_s12, 128  }
 0x226   : > { %1580 = vsyncadd (%p1347_p0), %s1071_s12, 4294967168  ;;  %p21_p3 = scmp.ge.s32.totalorder %s1717_s10, 4   ;;  %s2056_s21 = smov %s1587_s22 }
 0x227   : > { %s2057_s22 = smov %s1591_s23  ;;  %s2058_s23 = smov %s1727_s14 }
 0x228   : > { %s2059_s24 = smov %s1717_s10  ;;  %23 = sbr.rel (!%p21_p3) target bundleno = 10 (0xa), region = 101 }
 0x22d   :  { %1077 = vsyncpa [#allocation3], 1 }
 0x22e   :  { %1079 = vsyncpa [#allocation3 + $0x1], 1 }
 0x22f   :  { %1080 = vsyncpa [#allocation6], 1 }
 0x230   :  { %1081 = vsyncpa [#allocation9], 1 }
 0x231   :  { %1082 = vsyncpa [#allocation4], 1 }
 0x232   :  { %1084 = vsyncpa [#allocation4 + $0x1], 1 }

</bundles_post_ra>
